<compile_context>
chip_gen: v7x
topology: tpu7x:2x2x1
jax: 0.10.0
libtpu: 0.0.40
codegen_flags: <defaults>
</compile_context>

<pallas_src>
import functools

import jax
import jax.numpy as jnp
from jax.experimental import pallas as pl
from jax.experimental.pallas import tpu as pltpu

BN_EPS = 1e-5
_LANE = 128
_SUBLANE = 8


def _round_up(x, m):
    return (x + m - 1) // m * m


def _vmem_limit_bytes(*buffer_bytes):
    """Generation-aware scoped-VMEM limit.

    ~75% of physical VMEM (128 MiB on v5e/v6e, 64 MiB on v7x), floored at a
    generous multiple of the double-buffered block footprint, falling back to
    a conservative 48 MiB if the hardware query is unavailable.
    """
    est = 8 * sum(buffer_bytes)          # 2x double-buffer * 4x headroom
    try:
        cap = getattr(pltpu.get_tpu_info(), "vmem_capacity_bytes", None)
    except Exception:
        cap = None
    if not cap:
        cap = 64 << 20                   # conservative: v7x physical VMEM
    cap = (int(cap) * 3) // 4
    return int(min(max(est, 16 << 20), cap))


def _sigmoid(x):
    # tanh form keeps the transcendental on the EUP slot (no VALU divide).
    return 0.5 * jnp.tanh(0.5 * x) + 0.5


# --------------------------------------------------------------------------
# Kernels
# --------------------------------------------------------------------------
def _fused_single_tile_kernel(x_ref, w1_ref, b1_ref, gamma_ref, beta_ref,
                              w2_ref, b2_ref, out_ref, *, batch, matmul_dtype):
    """Whole (padded) batch in one tile: the entire forward in ONE kernel.

    h never touches HBM; BN uses centered (numerically safe) biased variance.
    """
    h = jnp.dot(x_ref[...], w1_ref[...],
                preferred_element_type=jnp.float32) + b1_ref[...]
    rows = jax.lax.broadcasted_iota(jnp.int32, (h.shape[0], 1), 0)
    valid = rows < batch
    inv_n = 1.0 / batch
    hm = jnp.where(valid, h, 0.0)
    mean = jnp.sum(hm, axis=0, keepdims=True) * inv_n
    centered = jnp.where(valid, h - mean, 0.0)
    var = jnp.sum(centered * centered, axis=0, keepdims=True) * inv_n  # biased
    inv_std = jax.lax.rsqrt(var + BN_EPS)
    scale = gamma_ref[...] * inv_std
    shift = beta_ref[...] - mean * scale
    hn = jnp.maximum(h * scale + shift, 0.0)
    logits = jnp.dot(hn.astype(matmul_dtype), w2_ref[...],
                     preferred_element_type=jnp.float32) + b2_ref[...]
    out_ref[...] = _sigmoid(logits)


def _stats_kernel(x_ref, w1_ref, b1_ref, stats_ref, *, batch, tile_b):
    """Pass 1 (tiled path): per-tile BN partial sums of h = x @ W1 + b1.

    Only the (1, 2, H_p) partial sums are written to HBM -- h itself is not.
    Zero-padded batch rows are masked out of the statistics.
    """
    h = jnp.dot(x_ref[...], w1_ref[...],
                preferred_element_type=jnp.float32) + b1_ref[...]
    rows = (pl.program_id(0) * tile_b
            + jax.lax.broadcasted_iota(jnp.int32, (tile_b, 1), 0))
    hm = jnp.where(rows < batch, h, 0.0)
    stats = jnp.concatenate(
        [jnp.sum(hm, axis=0, keepdims=True),
         jnp.sum(hm * hm, axis=0, keepdims=True)], axis=0)      # (2, H_p)
    stats_ref[...] = stats[None, :, :]


def _bn_relu_linear2_kernel(x_ref, w1_ref, b1_ref, scale_ref, shift_ref,
                            w2_ref, b2_ref, out_ref, *, matmul_dtype):
    """Pass 2 (tiled path): recompute h = x @ W1 + b1 (cheaper than a
    B*H*4-byte HBM round-trip), then BN affine -> ReLU -> linear2 -> sigmoid."""
    h = jnp.dot(x_ref[...], w1_ref[...],
                preferred_element_type=jnp.float32) + b1_ref[...]
    hn = jnp.maximum(h * scale_ref[...] + shift_ref[...], 0.0)
    logits = jnp.dot(hn.astype(matmul_dtype), w2_ref[...],
                     preferred_element_type=jnp.float32) + b2_ref[...]
    out_ref[...] = _sigmoid(logits)


# --------------------------------------------------------------------------
# Wrapper
# --------------------------------------------------------------------------
def pack_params(w1, b1, gamma, beta, w2, b2, *, matmul_dtype=jnp.bfloat16):
    """Pad + cast weights ONCE (hoisted out of the per-call forward).

    Weights are stored transposed vs torch: (in_features, out_features).
    Returns (params_dict, (D_in, H, D_out)).
    """
    D_in, H = w1.shape
    D_out = w2.shape[1]
    D_in_p, H_p, D_out_p = (_round_up(d, _LANE) for d in (D_in, H, D_out))
    f32 = jnp.float32
    params = dict(
        w1=jnp.pad(w1.astype(matmul_dtype), ((0, D_in_p - D_in), (0, H_p - H))),
        b1=jnp.pad(b1.astype(f32).reshape(1, H), ((0, 0), (0, H_p - H))),
        gamma=jnp.pad(gamma.astype(f32).reshape(1, H), ((0, 0), (0, H_p - H))),
        beta=jnp.pad(beta.astype(f32).reshape(1, H), ((0, 0), (0, H_p - H))),
        w2=jnp.pad(w2.astype(matmul_dtype),
                   ((0, H_p - H), (0, D_out_p - D_out))),
        b2=jnp.pad(b2.astype(f32).reshape(1, D_out),
                   ((0, 0), (0, D_out_p - D_out))),
    )
    return params, (D_in, H, D_out)


@functools.partial(jax.jit, static_argnames=("dims", "matmul_dtype", "block_b"))
def mlp_multilabel_forward_packed(x, params, *, dims,
                                  matmul_dtype=jnp.bfloat16, block_b=1024):
    """Forward pass of MLPMultiLabel (training-mode BatchNorm) on packed params."""
    D_in, H, D_out = dims
    B = x.shape[0]
    w1, b1 = params["w1"], params["b1"]
    gamma, beta = params["gamma"], params["beta"]
    w2, b2 = params["w2"], params["b2"]
    D_in_p, H_p = w1.shape
    D_out_p = w2.shape[1]
    msize = jnp.dtype(matmul_dtype).itemsize

    block_b = max(_SUBLANE, _round_up(block_b, _SUBLANE))
    B8 = _round_up(B, _SUBLANE)
    single_tile = B8 <= block_b

    if single_tile:
        tb, n_tiles = B8, 1
    else:
        # >= 2 batch tiles so v7x's second TensorCore gets work.
        tb = min(block_b, max(_SUBLANE, _round_up((B + 1) // 2, _SUBLANE)))
        n_tiles = (B + tb - 1) // tb
    B_p = n_tiles * tb

    # Pad / cast x directly in the matmul dtype (no intermediate f32 copy).
    xp = jnp.pad(x.astype(matmul_dtype), ((0, B_p - B), (0, D_in_p - D_in)))

    if single_tile:
        # ---- fully fused single-launch path (small batches) ----------------
        vmem = _vmem_limit_bytes(tb * D_in_p * msize,
                                 D_in_p * H_p * msize,
                                 4 * H_p * 4,
                                 H_p * D_out_p * msize,
                                 D_out_p * 4,
                                 tb * H_p * 4,            # h stays on-chip
                                 tb * D_out_p * 4)
        out_p = pl.pallas_call(
            functools.partial(_fused_single_tile_kernel, batch=B,
                              matmul_dtype=matmul_dtype),
            grid=(1,),
            in_specs=[
                pl.BlockSpec((tb, D_in_p), lambda i: (0, 0)),
                pl.BlockSpec((D_in_p, H_p), lambda i: (0, 0)),
                pl.BlockSpec((1, H_p), lambda i: (0, 0)),
                pl.BlockSpec((1, H_p), lambda i: (0, 0)),
                pl.BlockSpec((1, H_p), lambda i: (0, 0)),
                pl.BlockSpec((H_p, D_out_p), lambda i: (0, 0)),
                pl.BlockSpec((1, D_out_p), lambda i: (0, 0)),
            ],
            out_specs=pl.BlockSpec((tb, D_out_p), lambda i: (0, 0)),
            out_shape=jax.ShapeDtypeStruct((B_p, D_out_p), jnp.float32),
            compiler_params=pltpu.CompilerParams(
                dimension_semantics=("arbitrary",),
                vmem_limit_bytes=vmem),
        )(xp, w1, b1, gamma, beta, w2, b2)
        return out_p[:B, :D_out]

    # ---- pass 1: BN partial sums only (h never written to HBM) -------------
    vmem1 = _vmem_limit_bytes(tb * D_in_p * msize,      # x tile
                              D_in_p * H_p * msize,     # resident W1
                              H_p * 4,                  # b1
                              tb * H_p * 4,             # h (on-chip only)
                              2 * H_p * 4)              # stats tile out
    stat_partials = pl.pallas_call(
        functools.partial(_stats_kernel, batch=B, tile_b=tb),
        grid=(n_tiles,),
        in_specs=[
            pl.BlockSpec((tb, D_in_p), lambda i: (i, 0)),
            pl.BlockSpec((D_in_p, H_p), lambda i: (0, 0)),   # VMEM-resident
            pl.BlockSpec((1, H_p), lambda i: (0, 0)),        # VMEM-resident
        ],
        out_specs=pl.BlockSpec((1, 2, H_p), lambda i: (i, 0, 0)),
        out_shape=jax.ShapeDtypeStruct((n_tiles, 2, H_p), jnp.float32),
        compiler_params=pltpu.CompilerParams(
            dimension_semantics=("parallel",),
            vmem_limit_bytes=vmem1),
    )(xp, w1, b1)

    # ---- finish BN statistics (tiny H-wide math, plain JAX) -----------------
    # Uncentered E[h^2]-E[h]^2 (avoids a third full pass over x); fold
    # gamma/beta into a single scale/shift applied in pass 2.
    sums = jnp.sum(stat_partials, axis=0)                    # (2, H_p)
    inv_n = 1.0 / B
    mean = sums[0] * inv_n
    var = jnp.maximum(sums[1] * inv_n - mean * mean, 0.0)    # biased (training)
    inv_std = jax.lax.rsqrt(var + BN_EPS)
    scale_vec = gamma[0] * inv_std
    shift_vec = beta[0] - mean * scale_vec
    scale = scale_vec.reshape(1, H_p)
    shift = shift_vec.reshape(1, H_p)

    # ---- pass 2: recompute linear1 + BN affine + ReLU + linear2 + sigmoid ---
    vmem2 = _vmem_limit_bytes(tb * D_in_p * msize,           # x tile
                              D_in_p * H_p * msize,          # resident W1
                              3 * H_p * 4,                   # b1 + scale + shift
                              H_p * D_out_p * msize,         # resident W2
                              D_out_p * 4,                   # b2
                              tb * D_out_p * 4)              # out tile
    out_p = pl.pallas_call(
        functools.partial(_bn_relu_linear2_kernel, matmul_dtype=matmul_dtype),
        grid=(n_tiles,),
        in_specs=[
            pl.BlockSpec((tb, D_in_p), lambda i: (i, 0)),
            pl.BlockSpec((D_in_p, H_p), lambda i: (0, 0)),   # VMEM-resident
            pl.BlockSpec((1, H_p), lambda i: (0, 0)),        # VMEM-resident
            pl.BlockSpec((1, H_p), lambda i: (0, 0)),        # VMEM-resident
            pl.BlockSpec((1, H_p), lambda i: (0, 0)),        # VMEM-resident
            pl.BlockSpec((H_p, D_out_p), lambda i: (0, 0)),  # VMEM-resident
            pl.BlockSpec((1, D_out_p), lambda i: (0, 0)),    # VMEM-resident
        ],
        out_specs=pl.BlockSpec((tb, D_out_p), lambda i: (i, 0)),
        out_shape=jax.ShapeDtypeStruct((B_p, D_out_p), jnp.float32),
        compiler_params=pltpu.CompilerParams(
            dimension_semantics=("parallel",),
            vmem_limit_bytes=vmem2),
    )(xp, w1, b1, scale, shift, w2, b2)

    return out_p[:B, :D_out]


def mlp_multilabel_forward(x, w1, b1, gamma, beta, w2, b2, *,
                           matmul_dtype=jnp.bfloat16, block_b=1024):
    """Convenience wrapper: packs weights and runs the forward (for one-off use;
    for repeated calls, call pack_params() once and reuse the packed params)."""
    params, dims = pack_params(w1, b1, gamma, beta, w2, b2,
                               matmul_dtype=matmul_dtype)
    return mlp_multilabel_forward_packed(x, params, dims=dims,
                                         matmul_dtype=matmul_dtype,
                                         block_b=block_b)


def _reference(x, w1, b1, gamma, beta, w2, b2, matmul_dtype=jnp.bfloat16):
    """Pure-JAX reference mirroring the kernel's matmul-operand casting."""
    mm = lambda a, b: jnp.dot(a.astype(matmul_dtype), b.astype(matmul_dtype),
                              preferred_element_type=jnp.float32)
    h = mm(x, w1) + b1.reshape(1, -1)
    mean = jnp.mean(h, axis=0, keepdims=True)
    var = jnp.mean((h - mean) ** 2, axis=0, keepdims=True)   # biased, training
    h = (h - mean) * jax.lax.rsqrt(var + BN_EPS) * gamma.reshape(1, -1) \
        + beta.reshape(1, -1)
    h = jnp.maximum(h, 0.0)
    return jax.nn.sigmoid(mm(h, w2) + b2.reshape(1, -1))


if __name__ == "__main__":
    # Small shapes consistent with the module: hidden_dim = (in + out) // 2.
    batch = 8
    input_dim = 32
    output_dim = 16
    hidden_dim = (input_dim + output_dim) // 2  # 24

    key = jax.random.PRNGKey(0)
    k_x, k_w1, k_b1, k_w2, k_b2, k_x2 = jax.random.split(key, 6)

    x = jax.random.normal(k_x, (batch, input_dim), dtype=jnp.float32)

    # Deterministic init (uniform, torch.nn.Linear-style fan-in scaling);
    # weights stored as (in_features, out_features).
    lim1 = 1.0 / jnp.sqrt(input_dim)
    w1 = jax.random.uniform(k_w1, (input_dim, hidden_dim),
                            minval=-lim1, maxval=lim1, dtype=jnp.float32)
    b1 = jax.random.uniform(k_b1, (hidden_dim,),
                            minval=-lim1, maxval=lim1, dtype=jnp.float32)
    gamma = jnp.ones((hidden_dim,), dtype=jnp.float32)   # BatchNorm1d init
    beta = jnp.zeros((hidden_dim,), dtype=jnp.float32)
    lim2 = 1.0 / jnp.sqrt(hidden_dim)
    w2 = jax.random.uniform(k_w2, (hidden_dim, output_dim),
                            minval=-lim2, maxval=lim2, dtype=jnp.float32)
    b2 = jax.random.uniform(k_b2, (output_dim,),
                            minval=-lim2, maxval=lim2, dtype=jnp.float32)

    # Pack weights once (padding/casting hoisted out of the per-call forward).
    params, dims = pack_params(w1, b1, gamma, beta, w2, b2,
                               matmul_dtype=jnp.bfloat16)

    # Small batch -> fully fused single pallas_call path.
    out = jax.block_until_ready(
        mlp_multilabel_forward_packed(x, params, dims=dims,
                                      matmul_dtype=jnp.bfloat16))
    ref = _reference(x, w1, b1, gamma, beta, w2, b2, matmul_dtype=jnp.bfloat16)
    assert out.shape == (batch, output_dim)
    assert jnp.allclose(out, ref, atol=5e-3), "fused bf16 path mismatch vs reference"

    # Larger batch with a small block_b to exercise the two-pass tiled path
    # (stats pass + recompute pass) and the parallel batch grid.
    batch2 = 64
    x2 = jax.random.normal(k_x2, (batch2, input_dim), dtype=jnp.float32)
    out2 = jax.block_until_ready(
        mlp_multilabel_forward_packed(x2, params, dims=dims,
                                      matmul_dtype=jnp.bfloat16, block_b=16))
    ref2 = _reference(x2, w1, b1, gamma, beta, w2, b2, matmul_dtype=jnp.bfloat16)
    assert out2.shape == (batch2, output_dim)
    assert jnp.allclose(out2, ref2, atol=5e-3), "tiled bf16 path mismatch vs reference"

    # Optional full-f32 matmul operands (strict accuracy budgets); bf16 stays
    # the recommended default on all TPU generations (v5e MXU runs bf16 natively).
    out3 = jax.block_until_ready(
        mlp_multilabel_forward(x2, w1, b1, gamma, beta, w2, b2,
                               matmul_dtype=jnp.float32, block_b=16))
    ref3 = _reference(x2, w1, b1, gamma, beta, w2, b2, matmul_dtype=jnp.float32)
    assert jnp.allclose(out3, ref3, atol=2e-3), "f32 path mismatch vs reference"

    print("KERNEL_OK")
</pallas_src>

<mosaic_0001>
module attributes {stable_mosaic.version = 11 : i64} {
  func.func @_fused_single_tile_kernel(%arg0: i32, %arg1: memref<8x128xbf16, #tpu.memory_space<vmem>>, %arg2: memref<128x128xbf16, #tpu.memory_space<vmem>>, %arg3: memref<1x128xf32, #tpu.memory_space<vmem>>, %arg4: memref<1x128xf32, #tpu.memory_space<vmem>>, %arg5: memref<1x128xf32, #tpu.memory_space<vmem>>, %arg6: memref<128x128xbf16, #tpu.memory_space<vmem>>, %arg7: memref<1x128xf32, #tpu.memory_space<vmem>>, %arg8: memref<8x128xf32, #tpu.memory_space<vmem>>) attributes {dimension_semantics = [#tpu.dimension_semantics<arbitrary>], iteration_bounds = array<i64: 1>, scalar_prefetch = 0 : i64, scratch_operands = 0 : i64, tpu.core_type = #tpu.core_type<tc>, window_params = [{pipeline_mode = #tpu.pipeline_mode<synchronous>, transform_indices = @transform_0, window_bounds = array<i64: 8, 128>}, {pipeline_mode = #tpu.pipeline_mode<synchronous>, transform_indices = @transform_1, window_bounds = array<i64: 128, 128>}, {pipeline_mode = #tpu.pipeline_mode<synchronous>, transform_indices = @transform_2, window_bounds = array<i64: 1, 128>}, {pipeline_mode = #tpu.pipeline_mode<synchronous>, transform_indices = @transform_3, window_bounds = array<i64: 1, 128>}, {pipeline_mode = #tpu.pipeline_mode<synchronous>, transform_indices = @transform_4, window_bounds = array<i64: 1, 128>}, {pipeline_mode = #tpu.pipeline_mode<synchronous>, transform_indices = @transform_5, window_bounds = array<i64: 128, 128>}, {pipeline_mode = #tpu.pipeline_mode<synchronous>, transform_indices = @transform_6, window_bounds = array<i64: 1, 128>}, {pipeline_mode = #tpu.pipeline_mode<synchronous>, transform_indices = @transform_7, window_bounds = array<i64: 8, 128>}]} {
    %c0 = arith.constant 0 : index
    %c0_0 = arith.constant 0 : index
    %0 = vector.load %arg1[%c0, %c0_0] : memref<8x128xbf16, #tpu.memory_space<vmem>>, vector<8x128xbf16>
    %c0_1 = arith.constant 0 : index
    %c0_2 = arith.constant 0 : index
    %1 = vector.load %arg2[%c0_1, %c0_2] : memref<128x128xbf16, #tpu.memory_space<vmem>>, vector<128x128xbf16>
    %cst = arith.constant dense<0.000000e+00> : vector<8x128xf32>
    %2 = tpu.matmul %0, %1, %cst {dimension_numbers = #tpu.dot_dimension_numbers<[1], [0], [0], [1], [0, 0, 1, 1], [], []>} : vector<8x128xbf16>, vector<128x128xbf16>, vector<8x128xf32> -> vector<8x128xf32>
    %c0_3 = arith.constant 0 : index
    %c0_4 = arith.constant 0 : index
    %3 = vector.load %arg3[%c0_3, %c0_4] : memref<1x128xf32, #tpu.memory_space<vmem>>, vector<1x128xf32>
    %4 = vector.broadcast %3 : vector<1x128xf32> to vector<8x128xf32>
    %5 = arith.addf %2, %4 : vector<8x128xf32>
    %6 = tpu.iota {dimensions = array<i32: 0>} : vector<8x1xi32>
    %c8_i32 = arith.constant 8 : i32
    %7 = vector.broadcast %c8_i32 : i32 to vector<8x1xi32>
    %8 = arith.cmpi slt, %6, %7 : vector<8x1xi32>
    %cst_5 = arith.constant 0.000000e+00 : f32
    %9 = vector.shape_cast %8 : vector<8x1xi1> to vector<8x1xi1>
    %10 = vector.broadcast %9 : vector<8x1xi1> to vector<8x128xi1>
    %11 = vector.broadcast %cst_5 : f32 to vector<8x128xf32>
    %12 = arith.select %10, %5, %11 : vector<8x128xi1>, vector<8x128xf32>
    %cst_6 = arith.constant dense<0.000000e+00> : vector<128xf32>
    %13 = vector.multi_reduction <add>, %12, %cst_6 [0] : vector<8x128xf32> to vector<128xf32>
    %14 = vector.shape_cast %13 : vector<128xf32> to vector<1x128xf32>
    %cst_7 = arith.constant 1.250000e-01 : f32
    %15 = vector.broadcast %cst_7 : f32 to vector<1x128xf32>
    %16 = arith.mulf %14, %15 : vector<1x128xf32>
    %17 = vector.broadcast %16 : vector<1x128xf32> to vector<8x128xf32>
    %18 = arith.subf %5, %17 : vector<8x128xf32>
    %cst_8 = arith.constant 0.000000e+00 : f32
    %19 = vector.shape_cast %8 : vector<8x1xi1> to vector<8x1xi1>
    %20 = vector.broadcast %19 : vector<8x1xi1> to vector<8x128xi1>
    %21 = vector.broadcast %cst_8 : f32 to vector<8x128xf32>
    %22 = arith.select %20, %18, %21 : vector<8x128xi1>, vector<8x128xf32>
    %23 = arith.mulf %22, %22 : vector<8x128xf32>
    %cst_9 = arith.constant dense<0.000000e+00> : vector<128xf32>
    %24 = vector.multi_reduction <add>, %23, %cst_9 [0] : vector<8x128xf32> to vector<128xf32>
    %25 = vector.shape_cast %24 : vector<128xf32> to vector<1x128xf32>
    %cst_10 = arith.constant 1.250000e-01 : f32
    %26 = vector.broadcast %cst_10 : f32 to vector<1x128xf32>
    %27 = arith.mulf %25, %26 : vector<1x128xf32>
    %cst_11 = arith.constant 9.99999974E-6 : f32
    %28 = vector.broadcast %cst_11 : f32 to vector<1x128xf32>
    %29 = arith.addf %27, %28 : vector<1x128xf32>
    %30 = math.rsqrt %29 : vector<1x128xf32>
    %c0_12 = arith.constant 0 : index
    %c0_13 = arith.constant 0 : index
    %31 = vector.load %arg4[%c0_12, %c0_13] : memref<1x128xf32, #tpu.memory_space<vmem>>, vector<1x128xf32>
    %32 = arith.mulf %31, %30 : vector<1x128xf32>
    %c0_14 = arith.constant 0 : index
    %c0_15 = arith.constant 0 : index
    %33 = vector.load %arg5[%c0_14, %c0_15] : memref<1x128xf32, #tpu.memory_space<vmem>>, vector<1x128xf32>
    %34 = arith.mulf %16, %32 : vector<1x128xf32>
    %35 = arith.subf %33, %34 : vector<1x128xf32>
    %36 = vector.broadcast %32 : vector<1x128xf32> to vector<8x128xf32>
    %37 = arith.mulf %5, %36 : vector<8x128xf32>
    %38 = vector.broadcast %35 : vector<1x128xf32> to vector<8x128xf32>
    %39 = arith.addf %37, %38 : vector<8x128xf32>
    %cst_16 = arith.constant 0.000000e+00 : f32
    %40 = vector.broadcast %cst_16 : f32 to vector<8x128xf32>
    %41 = arith.maximumf %39, %40 : vector<8x128xf32>
    %42 = arith.truncf %41 : vector<8x128xf32> to vector<8x128xbf16>
    %c0_17 = arith.constant 0 : index
    %c0_18 = arith.constant 0 : index
    %43 = vector.load %arg6[%c0_17, %c0_18] : memref<128x128xbf16, #tpu.memory_space<vmem>>, vector<128x128xbf16>
    %cst_19 = arith.constant dense<0.000000e+00> : vector<8x128xf32>
    %44 = tpu.matmul %42, %43, %cst_19 {dimension_numbers = #tpu.dot_dimension_numbers<[1], [0], [0], [1], [0, 0, 1, 1], [], []>} : vector<8x128xbf16>, vector<128x128xbf16>, vector<8x128xf32> -> vector<8x128xf32>
    %c0_20 = arith.constant 0 : index
    %c0_21 = arith.constant 0 : index
    %45 = vector.load %arg7[%c0_20, %c0_21] : memref<1x128xf32, #tpu.memory_space<vmem>>, vector<1x128xf32>
    %46 = vector.broadcast %45 : vector<1x128xf32> to vector<8x128xf32>
    %47 = arith.addf %44, %46 : vector<8x128xf32>
    %cst_22 = arith.constant 5.000000e-01 : f32
    %48 = vector.broadcast %cst_22 : f32 to vector<8x128xf32>
    %49 = arith.mulf %48, %47 : vector<8x128xf32>
    %50 = math.tanh %49 : vector<8x128xf32>
    %cst_23 = arith.constant 5.000000e-01 : f32
    %51 = vector.broadcast %cst_23 : f32 to vector<8x128xf32>
    %52 = arith.mulf %51, %50 : vector<8x128xf32>
    %cst_24 = arith.constant 5.000000e-01 : f32
    %53 = vector.broadcast %cst_24 : f32 to vector<8x128xf32>
    %54 = arith.addf %52, %53 : vector<8x128xf32>
    %c0_25 = arith.constant 0 : index
    %c0_26 = arith.constant 0 : index
    %55 = vector.load %arg8[%c0_25, %c0_26] : memref<8x128xf32, #tpu.memory_space<vmem>>, vector<8x128xf32>
    tpu.vector_store %arg8[%c0_25, %c0_26], %54 {strides = array<i32>} : memref<8x128xf32, #tpu.memory_space<vmem>>, vector<8x128xf32>,
    return
  }
  func.func @transform_0(%arg0: i32) -> (i32, i32) {
    %c0_i32 = arith.constant 0 : i32
    %c0_i32_0 = arith.constant 0 : i32
    %c0_i32_1 = arith.constant 0 : i32
    return %c0_i32, %c0_i32_0 : i32, i32
  }
  func.func @transform_1(%arg0: i32) -> (i32, i32) {
    %c0_i32 = arith.constant 0 : i32
    %c0_i32_0 = arith.constant 0 : i32
    %c0_i32_1 = arith.constant 0 : i32
    return %c0_i32, %c0_i32_0 : i32, i32
  }
  func.func @transform_2(%arg0: i32) -> (i32, i32) {
    %c0_i32 = arith.constant 0 : i32
    %c0_i32_0 = arith.constant 0 : i32
    %c0_i32_1 = arith.constant 0 : i32
    return %c0_i32, %c0_i32_0 : i32, i32
  }
  func.func @transform_3(%arg0: i32) -> (i32, i32) {
    %c0_i32 = arith.constant 0 : i32
    %c0_i32_0 = arith.constant 0 : i32
    %c0_i32_1 = arith.constant 0 : i32
    return %c0_i32, %c0_i32_0 : i32, i32
  }
  func.func @transform_4(%arg0: i32) -> (i32, i32) {
    %c0_i32 = arith.constant 0 : i32
    %c0_i32_0 = arith.constant 0 : i32
    %c0_i32_1 = arith.constant 0 : i32
    return %c0_i32, %c0_i32_0 : i32, i32
  }
  func.func @transform_5(%arg0: i32) -> (i32, i32) {
    %c0_i32 = arith.constant 0 : i32
    %c0_i32_0 = arith.constant 0 : i32
    %c0_i32_1 = arith.constant 0 : i32
    return %c0_i32, %c0_i32_0 : i32, i32
  }
  func.func @transform_6(%arg0: i32) -> (i32, i32) {
    %c0_i32 = arith.constant 0 : i32
    %c0_i32_0 = arith.constant 0 : i32
    %c0_i32_1 = arith.constant 0 : i32
    return %c0_i32, %c0_i32_0 : i32, i32
  }
  func.func @transform_7(%arg0: i32) -> (i32, i32) {
    %c0_i32 = arith.constant 0 : i32
    %c0_i32_0 = arith.constant 0 : i32
    %c0_i32_1 = arith.constant 0 : i32
    return %c0_i32, %c0_i32_0 : i32, i32
  }
}

</mosaic_0001>

<bundles_post_ra>
// kernel: mlp_multilabel_forward_packed.1
= control target key start
LH: loop header
LB: loop body
LE: loop exit
PB: predicated region body
PF: predicated region fallthrough
CT: control target
= control target key end

     0   :  { %12 = vsyncpa [#allocation3], 0  ;;  %s619_s0 = inlined_call_operand.vmem [shape: bf16[8,128], index: 0, kind: input, shape index: {}]   ;;  %s620_s1 = inlined_call_operand.hbm [shape: bf16[128,128], index: 1, kind: input, shape index: {}]   ;;  %s621_s2 = inlined_call_operand.vmem [shape: f32[1,128], index: 2, kind: input, shape index: {}]   ;;  %s622_s3 = inlined_call_operand.vmem [shape: f32[1,128], index: 3, kind: input, shape index: {}]   ;;  %s623_s4 = inlined_call_operand.vmem [shape: f32[1,128], index: 4, kind: input, shape index: {}]   ;;  %s624_s5 = inlined_call_operand.hbm [shape: bf16[128,128], index: 5, kind: input, shape index: {}]   ;;  %s625_s6 = inlined_call_operand.vmem [shape: f32[1,128], index: 6, kind: input, shape index: {}]   ;;  %s626_s7 = inlined_call_operand.hbm [shape: f32[8,128], index: 7, kind: output, shape index: {}]  }
   0x1   :  { %13 = vsyncpa [#allocation6], 0 }
   0x2   :  { %14 = vsyncpa [#allocation4], 0  ;;  %s521_s24 = smov [#allocation2]   ;;  %s449_s28 = scalar_lea.hbm %s620_s1, 1024 }
   0x3   :  { %s22_s25 = sshll.u32 %s521_s24, 4  ;;  %p450_p0 = scmp.ne.s32.totalorder %s620_s1, %s449_s28  ;;  %s23_s25 = int_to_ptr.vmem [resolvable:$true] %s22_s25 }
   0x4   :  { %p453_p1 = scmp.lt.u32.totalorder %s449_s28, %s620_s1 }
   0x6   :  { %p455_p2 = pnand %p453_p1, %p450_p0 }
   0x8   :  { %458 = shalt.err (!%p455_p2)
}
   0x9   :  { %s459_s10 = scalar_lea.vmem %s23_s25, 1024  ;;  %p464_p4 = scmp.lt.s32.totalorder %s23_s25, %s23_s25 }
   0xa   :  { %p460_p3 = scmp.ne.s32.totalorder %s23_s25, %s459_s10  ;;  %p465_p5 = scmp.lt.s32.totalorder %s459_s10, %s459_s10 }
   0xc   :  { %p466_p6 = por %p465_p5, %p464_p4 }
   0xe   :  { %p467_p7 = pnand %p466_p6, %p460_p3 }
  0x10   :  { %470 = shalt.err (!%p467_p7)
}
  0x11   :  { %s522_s11 = smov 64   ;;  %s523_s12 = smov 4  }
  0x12   :  { %28 = dma.hbm_to_vmem [thread:$0]  %s620_s1, 1024, %s23_s25, [#allocation3], %s522_s11, %s522_s11, %s523_s12  }
  0x13   :  { %s524_s15 = smov [#allocation5]   ;;  %s471_s19 = scalar_lea.hbm %s624_s5, 1024 }
  0x14   :  { %s40_s16 = sshll.u32 %s524_s15, 4  ;;  %p472_p8 = scmp.ne.s32.totalorder %s624_s5, %s471_s19  ;;  %s41_s16 = int_to_ptr.vmem [resolvable:$true] %s40_s16 }
  0x15   :  { %p475_p9 = scmp.lt.u32.totalorder %s471_s19, %s624_s5 }
  0x17   :  { %p477_p10 = pnand %p475_p9, %p472_p8 }
  0x19   :  { %480 = shalt.err (!%p477_p10)
}
  0x1a   :  { %s481_s24 = scalar_lea.vmem %s41_s16, 1024  ;;  %p486_p12 = scmp.lt.s32.totalorder %s41_s16, %s41_s16 }
  0x1b   :  { %p482_p11 = scmp.ne.s32.totalorder %s41_s16, %s481_s24  ;;  %p487_p13 = scmp.lt.s32.totalorder %s481_s24, %s481_s24 }
  0x1d   :  { %p488_p0 = por %p487_p13, %p486_p12 }
  0x1f   :  { %p489_p1 = pnand %p488_p0, %p482_p11 }
  0x21   :  { %492 = shalt.err (!%p489_p1)
}
  0x22   :  { %46 = dma.hbm_to_vmem [thread:$0]  %s624_s5, 1024, %s41_s16, [#allocation6], %s522_s11, %s522_s11, %s523_s12  }
  0x23   :  { %515 = dma.done.wait [#allocation3], 1024  }
  0x24   :  { %516 = vsyncadd [#allocation3], 4294966272 }
  0x25   :  { %517 = dma.done.wait [#allocation6], 1024  }
  0x26   :  { %518 = vsyncadd [#allocation6], 4294966272  ;;  %v525_v0 = vmov 0.0   ;;  %vm526_vm0 = vmmov 0   ;;  %v429_v1 = vld [vmem:[#allocation2] sm:$0xff]   ;;  %v430_v2 = vld [vmem:[#allocation2 + $0x8] sm:$0xff]   ;;  %v199_v41 = vlaneseq }
  0x27   :  { %382 = vmatprep.subr.bf16.mxu0 %v525_v0  ;;  %398 = vmatprep.mubr.msk.bf16.mxu0 %vm526_vm0, %v525_v0  ;;  %v431_v3 = vld [vmem:[#allocation2 + $0x10] sm:$0xff]   ;;  %v432_v4 = vld [vmem:[#allocation2 + $0x18] sm:$0xff]   ;;  %v433_v5 = vld [vmem:[#allocation2 + $0x20] sm:$0xff]  }
  0x28   :  { %402 = vmatprep.subr.bf16.mxu1 %v525_v0  ;;  %418 = vmatprep.mubr.msk.bf16.mxu1 %vm526_vm0, %v525_v0  ;;  %v434_v6 = vld [vmem:[#allocation2 + $0x28] sm:$0xff]   ;;  %v435_v7 = vld [vmem:[#allocation2 + $0x30] sm:$0xff]   ;;  %v436_v8 = vld [vmem:[#allocation2 + $0x38] sm:$0xff]   ;;  %v200_v42 = vshrl.u32 %v199_v41, 7 }
  0x29   :  { %383 = vmatpush3.bf16.msra.mxu0 %v429_v1  ;;  %v56_v9 = vld [vmem:[%s619_s0] sm:$0xf]  ;;  %v438_v11 = vld [vmem:[#allocation5 + $0x8] sm:$0xff]   ;;  %v439_v12 = vld [vmem:[#allocation5 + $0x10] sm:$0xff]  }
  0x2a   :  { %384 = vmatprep.subr.bf16.mxu0 %v525_v0  ;;  %v437_v10 = vld [vmem:[#allocation5] sm:$0xff]   ;;  %v440_v13 = vld [vmem:[#allocation5 + $0x18] sm:$0xff]   ;;  %v442_v15 = vld [vmem:[#allocation5 + $0x28] sm:$0xff]   ;;  %v201_v44 = vsub.s32 0, %v200_v42 }
  0x2b   :  { %403 = vmatpush3.bf16.msra.mxu1 %v437_v10  ;;  %v441_v14 = vld [vmem:[#allocation5 + $0x20] sm:$0xff]   ;;  %v443_v16 = vld [vmem:[#allocation5 + $0x30] sm:$0xff]   ;;  %v444_v17 = vld [vmem:[#allocation5 + $0x38] sm:$0xff]  }
  0x2c   :  { %404 = vmatprep.subr.bf16.mxu1 %v525_v0  ;;  %v346_v18 = vld [vmem:[%s621_s2] ss:$0 sm:$0xff] }
  0x2d   :  { %385 = vmatpush3.bf16.msra.mxu0 %v430_v2  ;;  %v193_v43 = vld [vmem:[%s622_s3] sm:$0x1]  ;;  %s527_s3 = smov [#allocation7]  }
  0x2e   :  { %386 = vmatprep.subr.bf16.mxu0 %v525_v0  ;;  %v195_v47 = vld [vmem:[%s623_s4] sm:$0x1]  ;;  %s336_s4 = sshll.u32 %s527_s3, 4  ;;  %s337_s4 = int_to_ptr.vmem [resolvable:$true] %s336_s4 }
  0x2f   :  { %405 = vmatpush3.bf16.msra.mxu1 %v438_v11  ;;  %v355_v56 = vld [vmem:[%s625_s6] ss:$0 sm:$0xff]  ;;  %s493_s10 = scalar_lea.vmem %s337_s4, 128  ;;  %p498_p3 = scmp.lt.s32.totalorder %s337_s4, %s337_s4 }
  0x30   :  { %406 = vmatprep.subr.bf16.mxu1 %v525_v0  ;;  %p494_p2 = scmp.ne.s32.totalorder %s337_s4, %s493_s10  ;;  %p499_p4 = scmp.lt.s32.totalorder %s493_s10, %s493_s10 }
  0x31   :  { %387 = vmatpush3.bf16.msra.mxu0 %v431_v3 }
  0x32   :  { %388 = vmatprep.subr.bf16.mxu0 %v525_v0  ;;  %p500_p5 = por %p499_p4, %p498_p3 }
  0x33   :  { %407 = vmatpush3.bf16.msra.mxu1 %v439_v12 }
  0x34   :  { %408 = vmatprep.subr.bf16.mxu1 %v525_v0  ;;  %p501_p6 = pnand %p500_p5, %p494_p2 }
  0x35   :  { %389 = vmatpush3.bf16.msra.mxu0 %v432_v4 }
  0x36   :  { %390 = vmatprep.subr.bf16.mxu0 %v525_v0 }
  0x37   :  { %409 = vmatpush3.bf16.msra.mxu1 %v440_v13 }
  0x38   :  { %410 = vmatprep.subr.bf16.mxu1 %v525_v0 }
  0x39   :  { %391 = vmatpush3.bf16.msra.mxu0 %v433_v5 }
  0x3a   :  { %392 = vmatprep.subr.bf16.mxu0 %v525_v0 }
  0x3b   :  { %411 = vmatpush3.bf16.msra.mxu1 %v441_v14 }
  0x3c   :  { %412 = vmatprep.subr.bf16.mxu1 %v525_v0 }
  0x3d   :  { %393 = vmatpush3.bf16.msra.mxu0 %v434_v6 }
  0x3e   :  { %394 = vmatprep.subr.bf16.mxu0 %v525_v0 }
  0x3f   :  { %413 = vmatpush3.bf16.msra.mxu1 %v442_v15 }
  0x40   :  { %414 = vmatprep.subr.bf16.mxu1 %v525_v0 }
  0x41   :  { %395 = vmatpush3.bf16.msra.mxu0 %v435_v7 }
  0x42   :  { %396 = vmatprep.subr.bf16.mxu0 %v525_v0 }
  0x43   :  { %415 = vmatpush3.bf16.msra.mxu1 %v443_v16 }
  0x44   :  { %416 = vmatprep.subr.bf16.mxu1 %v525_v0 }
  0x45   :  { %397 = vmatpush3.bf16.msra.mxu0 %v436_v8 }
  0x47   :  { %417 = vmatpush3.bf16.msra.mxu1 %v444_v17 }
  0x48   :  { %399 = vmatmul.mubr.bf16.vlgmr.msra.gmra.mrb[0].mxu0 %v56_v9 }
 0x11b   :  { %v162_v19 = vpop.f32.mrb[0].mxu0 }
 0x11c   :  { %v163_v20 = vadd.f32 %v346_v18, %v162_v19  ;;  %v400_v21 = vpop.f32.mrb[1].mxu0 }
 0x11d   :  { %v165_v22 = vpop.f32.mrb[2].mxu0 }
 0x11e   :  { %v174_v23 = vrot.slane %v163_v20, 4  ;;  %v401_v24 = vpop.f32.mrb[3].mxu0 }
 0x120   :  { %v175_v25 = vadd.f32 %v174_v23, %v163_v20 }
 0x122   :  { %v176_v26 = vrot.slane %v175_v25, 2 }
 0x124   :  { %v177_v27 = vadd.f32 %v176_v26, %v175_v25 }
 0x126   :  { %v178_v28 = vrot.slane %v177_v27, 1 }
 0x128   :  { %v179_v29 = vadd.f32 %v178_v28, %v177_v27 }
 0x12a   :  { %v180_v30 = vmul.f32 0.125, %v179_v29 }
 0x12c   :  { %v181_v31 = vsub.f32 %v163_v20, %v180_v30 }
 0x12e   :  { %v183_v32 = vmul.f32 %v181_v31, %v181_v31 }
 0x130   :  { %v184_v33 = vrot.slane %v183_v32, 4 }
 0x132   :  { %v185_v34 = vadd.f32 %v184_v33, %v183_v32 }
 0x134   :  { %v186_v35 = vrot.slane %v185_v34, 2 }
 0x136   :  { %v187_v36 = vadd.f32 %v186_v35, %v185_v34 }
 0x138   :  { %v188_v37 = vrot.slane %v187_v36, 1 }
 0x13a   :  { %v189_v38 = vadd.f32 %v188_v37, %v187_v36 }
 0x13c   :  { %v190_v39 = vmul.f32 0.125, %v189_v38 }
 0x13e   :  { %v191_v40 = vadd.f32 1e-05, %v190_v39 }
 0x140   :  { %445 = vrsqrt.f32 %v191_v40 }
 0x14a   :  { %v446_v45 = vpop.eup %445 }
 0x14b   :  { %v194_v46 = vmul.f32 %v446_v45, %v193_v43 }
 0x14d   :  { %v196_v48 = vmul.f32 %v194_v46, %v180_v30  ;;  %v202_v49 = vrot.slane %v194_v46, %v201_v44 }
 0x14f   :  { %v197_v50 = vsub.f32 %v195_v47, %v196_v48  ;;  %v204_v51 = vmul.f32 %v202_v49, %v163_v20 }
 0x151   :  { %v209_v52 = vrot.slane %v197_v50, %v201_v44 }
 0x153   :  { %v211_v53 = vadd.f32 %v209_v52, %v204_v51 }
 0x155   :  { %v212_v54 = vmax.f32 %v211_v53, 0.0 }
 0x157   :  { %v213_v55 = vpack.c.bf16 %v212_v54, %v212_v54 }
 0x159   :  { %419 = vmatmul.mubr.bf16.vlgmr.msra.gmra.mrb[0].mxu1 %v213_v55 }
 0x22c   :  { %v319_v57 = vpop.f32.mrb[0].mxu1 }
 0x22d   :  { %v320_v58 = vadd.f32 %v355_v56, %v319_v57  ;;  %v420_v59 = vpop.f32.mrb[1].mxu1 }
 0x22e   :  { %v322_v60 = vpop.f32.mrb[2].mxu1 }
 0x22f   :  { %v325_v61 = vmul.f32 0.5, %v320_v58  ;;  %v421_v62 = vpop.f32.mrb[3].mxu1 }
 0x231   :  { %447 = vtanh.f32 %v325_v61 }
 0x23b   :  { %v448_v63 = vpop.eup %447 }
 0x23c   :  { %v327_v0 = vmul.f32 0.5, %v448_v63 }
 0x23e   :  { %v328_v1 = vadd.f32 0.5, %v327_v0 }
 0x240   :  { %329 = vst [vmem:[#allocation7] sm:$0xff] %v328_v1 }
 0x241   :  { %504 = shalt.err (!%p501_p6)
}
 0x242   :  { %s505_s12 = scalar_lea.hbm %s626_s7, 128 }
 0x243   :  { %p506_p7 = scmp.ne.s32.totalorder %s626_s7, %s505_s12  ;;  %p509_p8 = scmp.lt.u32.totalorder %s505_s12, %s626_s7 }
 0x245   :  { %p511_p9 = pnand %p509_p8, %p506_p7 }
 0x247   :  { %514 = shalt.err (!%p511_p9)
}
 0x248   :  { %339 = dma.vmem_to_hbm [thread:$0]  %s337_s4, 128, %s626_s7, [#allocation4]  }
 0x249   :  { %519 = dma.done.wait [#allocation4], 128  }
 0x24a   :  { %520 = vsyncadd [#allocation4], 4294967168 }
 0x24b   :  { %343 = vsyncpa [#allocation3], 1 }
 0x24c   :  { %344 = vsyncpa [#allocation6], 1 }
 0x24d   :  { %345 = vsyncpa [#allocation4], 1 }

</bundles_post_ra>
